<compile_context>
chip_gen: v7x
topology: tpu7x:2x2x1
jax: 0.10.0
libtpu: 0.0.40
codegen_flags: <defaults>
</compile_context>

<pallas_src>
import functools

import jax
import jax.numpy as jnp
from jax.experimental import pallas as pl
from jax.experimental.pallas import tpu as pltpu


def _round_up(x: int, m: int) -> int:
    return ((x + m - 1) // m) * m


def _ls_ce_kernel(x_ref, tgt_ref, out_ref, *,
                  smoothing: float, num_classes: int, num_rows: int,
                  tile_rows: int):
    i = pl.program_id(0)

    x = x_ref[...].astype(jnp.float32)        # (tile_rows, c_pad)
    tgt = tgt_ref[...]                        # (tile_rows, 1) int32

    tile_r, c_pad = x.shape

    # Class-axis validity mask (class padding up to a multiple of 128).
    col = jax.lax.broadcasted_iota(jnp.int32, (tile_r, c_pad), 1)
    class_valid = col < num_classes

    # Stable log-sum-exp over classes; padded classes forced to -1e30.
    neg_big = jnp.float32(-1e30)
    x_masked = jnp.where(class_valid, x, neg_big)
    row_max = jnp.max(x_masked, axis=-1, keepdims=True)            # (tile_r, 1)
    sum_exp = jnp.sum(jnp.exp(x_masked - row_max), axis=-1, keepdims=True)
    lse = row_max + jnp.log(sum_exp)                               # (tile_r, 1)

    # nll_loss = -(x[i, t] - lse) : gather via one-hot compare against targets.
    x_at_tgt = jnp.sum(jnp.where(col == tgt, x, 0.0), axis=-1, keepdims=True)
    nll = lse - x_at_tgt                                           # (tile_r, 1)

    # smooth_loss = -mean(logprobs) = lse - sum(x_valid) / C
    sum_x = jnp.sum(jnp.where(class_valid, x, 0.0), axis=-1, keepdims=True)
    smooth = lse - sum_x * (1.0 / num_classes)                     # (tile_r, 1)

    confidence = 1.0 - smoothing
    per_row = confidence * nll + smoothing * smooth                # (tile_r, 1)

    # Row-axis validity mask (batch padding up to a multiple of tile_rows).
    row = jax.lax.broadcasted_iota(jnp.int32, (tile_r, 1), 0) + i * tile_rows
    per_row = jnp.where(row < num_rows, per_row, 0.0)

    @pl.when(i == 0)
    def _():
        out_ref[...] = jnp.zeros_like(out_ref)

    # Accumulate this tile's contribution to the batch mean.
    out_ref[...] += jnp.sum(per_row, axis=0, keepdims=True) * (1.0 / num_rows)


def label_smoothing_cross_entropy(x: jax.Array, target: jax.Array,
                                  smoothing: float = 0.1) -> jax.Array:
    """Pallas implementation of LabelSmoothingCrossEntropy.forward(x, target)."""
    n, c = x.shape
    c_pad = max(_round_up(c, 128), 128)

    # Row tile: multiple of 8 sublanes, roughly <= 2 MiB of f32 per x tile so
    # double-buffered inputs stay well under the scoped VMEM limit on v7x.
    bytes_per_row = c_pad * 4
    budget_rows = ((2 * 1024 * 1024) // bytes_per_row) // 8 * 8
    tile_rows = max(8, min(_round_up(n, 8), max(budget_rows, 8)))
    n_pad = _round_up(n, tile_rows)

    # Pad; keep the input dtype (bf16 stays bf16 over HBM), cast in-kernel.
    x_p = jnp.zeros((n_pad, c_pad), dtype=x.dtype).at[:n, :c].set(x)
    tgt_p = jnp.zeros((n_pad, 1), dtype=jnp.int32).at[:n, 0].set(
        target.astype(jnp.int32))

    grid = (n_pad // tile_rows,)

    kernel = functools.partial(
        _ls_ce_kernel,
        smoothing=float(smoothing),
        num_classes=int(c),
        num_rows=int(n),
        tile_rows=int(tile_rows),
    )

    out = pl.pallas_call(
        kernel,
        out_shape=jax.ShapeDtypeStruct((1, 1), jnp.float32),
        grid_spec=pltpu.PrefetchScalarGridSpec(
            num_scalar_prefetch=0,
            grid=grid,
            in_specs=[
                pl.BlockSpec((tile_rows, c_pad), lambda i: (i, 0)),
                pl.BlockSpec((tile_rows, 1), lambda i: (i, 0)),
            ],
            out_specs=pl.BlockSpec((1, 1), lambda i: (0, 0)),
        ),
        compiler_params=pltpu.CompilerParams(
            dimension_semantics=("arbitrary",)),
    )(x_p, tgt_p)
    return out[0, 0]


def _ls_ce_ref(x, target, smoothing):
    """Pure-JAX reference mirroring the PyTorch module."""
    logprobs = jax.nn.log_softmax(x.astype(jnp.float32), axis=-1)
    nll = -jnp.take_along_axis(
        logprobs, target[:, None].astype(jnp.int32), axis=-1)[:, 0]
    smooth = -jnp.mean(logprobs, axis=-1)
    confidence = 1.0 - smoothing
    return jnp.mean(confidence * nll + smoothing * smooth)


if __name__ == "__main__":
    smoothing = 0.1  # module __init__ default

    key = jax.random.PRNGKey(0)
    kx, kt = jax.random.split(key)
    batch, n_classes = 8, 32
    x = jax.random.normal(kx, (batch, n_classes), dtype=jnp.float32)
    target = jax.random.randint(kt, (batch,), 0, n_classes, dtype=jnp.int32)

    loss = label_smoothing_cross_entropy(x, target, smoothing)
    loss = jax.block_until_ready(loss)

    ref = _ls_ce_ref(x, target, smoothing)
    assert jnp.allclose(loss, ref, rtol=1e-5, atol=1e-5), (loss, ref)

    print("KERNEL_OK")
</pallas_src>

<mosaic_0001>
module attributes {stable_mosaic.version = 11 : i64} {
  func.func @_ls_ce_kernel(%arg0: i32, %arg1: memref<8x128xf32, #tpu.memory_space<vmem>>, %arg2: memref<8x1xi32, #tpu.memory_space<vmem>>, %arg3: memref<1x1xf32, #tpu.memory_space<vmem>>) attributes {dimension_semantics = [#tpu.dimension_semantics<arbitrary>], iteration_bounds = array<i64: 1>, scalar_prefetch = 0 : i64, scratch_operands = 0 : i64, tpu.core_type = #tpu.core_type<tc>, window_params = [{transform_indices = @transform_0, window_bounds = array<i64: 8, 128>}, {transform_indices = @transform_1, window_bounds = array<i64: 8, 1>}, {pipeline_mode = #tpu.pipeline_mode<synchronous>, transform_indices = @transform_2, window_bounds = array<i64: 1, 1>}]} {
    %c0 = arith.constant 0 : index
    %c0_0 = arith.constant 0 : index
    %0 = vector.load %arg1[%c0, %c0_0] : memref<8x128xf32, #tpu.memory_space<vmem>>, vector<8x128xf32>
    %c0_1 = arith.constant 0 : index
    %c0_2 = arith.constant 0 : index
    %1 = vector.load %arg2[%c0_1, %c0_2] : memref<8x1xi32, #tpu.memory_space<vmem>>, vector<8x1xi32>
    %2 = tpu.iota {dimensions = array<i32: 1>} : vector<8x128xi32>
    %c32_i32 = arith.constant 32 : i32
    %3 = vector.broadcast %c32_i32 : i32 to vector<8x128xi32>
    %4 = arith.cmpi slt, %2, %3 : vector<8x128xi32>
    %cst = arith.constant -1.000000e+30 : f32
    %5 = vector.broadcast %cst : f32 to vector<8x128xf32>
    %6 = arith.select %4, %0, %5 : vector<8x128xi1>, vector<8x128xf32>
    %cst_3 = arith.constant dense<0xFF800000> : vector<8xf32>
    %7 = vector.multi_reduction <maximumf>, %6, %cst_3 [1] : vector<8x128xf32> to vector<8xf32>
    %8 = vector.shape_cast %7 : vector<8xf32> to vector<8x1xf32>
    %9 = vector.broadcast %8 : vector<8x1xf32> to vector<8x128xf32>
    %10 = arith.subf %6, %9 : vector<8x128xf32>
    %11 = math.exp %10 : vector<8x128xf32>
    %cst_4 = arith.constant dense<0.000000e+00> : vector<8xf32>
    %12 = vector.multi_reduction <add>, %11, %cst_4 [1] : vector<8x128xf32> to vector<8xf32>
    %13 = vector.shape_cast %12 : vector<8xf32> to vector<8x1xf32>
    %14 = math.log %13 : vector<8x1xf32>
    %15 = arith.addf %8, %14 : vector<8x1xf32>
    %16 = vector.broadcast %1 : vector<8x1xi32> to vector<8x128xi32>
    %17 = arith.cmpi eq, %2, %16 : vector<8x128xi32>
    %cst_5 = arith.constant 0.000000e+00 : f32
    %18 = vector.broadcast %cst_5 : f32 to vector<8x128xf32>
    %19 = arith.select %17, %0, %18 : vector<8x128xi1>, vector<8x128xf32>
    %cst_6 = arith.constant dense<0.000000e+00> : vector<8xf32>
    %20 = vector.multi_reduction <add>, %19, %cst_6 [1] : vector<8x128xf32> to vector<8xf32>
    %21 = vector.shape_cast %20 : vector<8xf32> to vector<8x1xf32>
    %22 = arith.subf %15, %21 : vector<8x1xf32>
    %cst_7 = arith.constant 0.000000e+00 : f32
    %23 = vector.broadcast %cst_7 : f32 to vector<8x128xf32>
    %24 = arith.select %4, %0, %23 : vector<8x128xi1>, vector<8x128xf32>
    %cst_8 = arith.constant dense<0.000000e+00> : vector<8xf32>
    %25 = vector.multi_reduction <add>, %24, %cst_8 [1] : vector<8x128xf32> to vector<8xf32>
    %26 = vector.shape_cast %25 : vector<8xf32> to vector<8x1xf32>
    %cst_9 = arith.constant 3.125000e-02 : f32
    %27 = vector.broadcast %cst_9 : f32 to vector<8x1xf32>
    %28 = arith.mulf %26, %27 : vector<8x1xf32>
    %29 = arith.subf %15, %28 : vector<8x1xf32>
    %cst_10 = arith.constant 0.899999976 : f32
    %30 = vector.broadcast %cst_10 : f32 to vector<8x1xf32>
    %31 = arith.mulf %30, %22 : vector<8x1xf32>
    %cst_11 = arith.constant 1.000000e-01 : f32
    %32 = vector.broadcast %cst_11 : f32 to vector<8x1xf32>
    %33 = arith.mulf %32, %29 : vector<8x1xf32>
    %34 = arith.addf %31, %33 : vector<8x1xf32>
    %35 = tpu.iota {dimensions = array<i32: 0>} : vector<8x1xi32>
    %c8_i32 = arith.constant 8 : i32
    %36 = arith.muli %arg0, %c8_i32 : i32
    %37 = vector.broadcast %36 : i32 to vector<8x1xi32>
    %38 = arith.addi %35, %37 : vector<8x1xi32>
    %c8_i32_12 = arith.constant 8 : i32
    %39 = vector.broadcast %c8_i32_12 : i32 to vector<8x1xi32>
    %40 = arith.cmpi slt, %38, %39 : vector<8x1xi32>
    %cst_13 = arith.constant 0.000000e+00 : f32
    %41 = vector.broadcast %cst_13 : f32 to vector<8x1xf32>
    %42 = arith.select %40, %34, %41 : vector<8x1xi1>, vector<8x1xf32>
    %c0_i32 = arith.constant 0 : i32
    %43 = arith.cmpi eq, %arg0, %c0_i32 : i32
    %44 = arith.extui %43 : i1 to i32
    %c0_i32_14 = arith.constant 0 : i32
    %45 = arith.cmpi ne, %44, %c0_i32_14 : i32
    scf.if %45 {
      %cst_21 = arith.constant 0.000000e+00 : f32
      %53 = vector.broadcast %cst_21 : f32 to vector<1x1xf32>
      %c0_22 = arith.constant 0 : index
      %c0_23 = arith.constant 0 : index
      %54 = vector.load %arg3[%c0_22, %c0_23] : memref<1x1xf32, #tpu.memory_space<vmem>>, vector<1x1xf32>
      tpu.vector_store %arg3[%c0_22, %c0_23], %53 {strides = array<i32>} : memref<1x1xf32, #tpu.memory_space<vmem>>, vector<1x1xf32>,
    } else {
    }
    %c0_15 = arith.constant 0 : index
    %c0_16 = arith.constant 0 : index
    %46 = vector.load %arg3[%c0_15, %c0_16] : memref<1x1xf32, #tpu.memory_space<vmem>>, vector<1x1xf32>
    %cst_17 = arith.constant dense<0.000000e+00> : vector<1xf32>
    %47 = vector.multi_reduction <add>, %42, %cst_17 [0] : vector<8x1xf32> to vector<1xf32>
    %48 = vector.shape_cast %47 : vector<1xf32> to vector<1x1xf32>
    %cst_18 = arith.constant 1.250000e-01 : f32
    %49 = vector.broadcast %cst_18 : f32 to vector<1x1xf32>
    %50 = arith.mulf %48, %49 : vector<1x1xf32>
    %51 = arith.addf %46, %50 : vector<1x1xf32>
    %c0_19 = arith.constant 0 : index
    %c0_20 = arith.constant 0 : index
    %52 = vector.load %arg3[%c0_19, %c0_20] : memref<1x1xf32, #tpu.memory_space<vmem>>, vector<1x1xf32>
    tpu.vector_store %arg3[%c0_19, %c0_20], %51 {strides = array<i32>} : memref<1x1xf32, #tpu.memory_space<vmem>>, vector<1x1xf32>,
    return
  }
  func.func @transform_0(%arg0: i32) -> (i32, i32) {
    %c0_i32 = arith.constant 0 : i32
    %c0_i32_0 = arith.constant 0 : i32
    return %arg0, %c0_i32 : i32, i32
  }
  func.func @transform_1(%arg0: i32) -> (i32, i32) {
    %c0_i32 = arith.constant 0 : i32
    %c0_i32_0 = arith.constant 0 : i32
    return %arg0, %c0_i32 : i32, i32
  }
  func.func @transform_2(%arg0: i32) -> (i32, i32) {
    %c0_i32 = arith.constant 0 : i32
    %c0_i32_0 = arith.constant 0 : i32
    %c0_i32_1 = arith.constant 0 : i32
    return %c0_i32, %c0_i32_0 : i32, i32
  }
}

</mosaic_0001>

<bundles_post_ra>
// kernel: tpu_custom_call.1
= control target key start
LH: loop header
LB: loop body
LE: loop exit
PB: predicated region body
PF: predicated region fallthrough
CT: control target
= control target key end

     0   :  { %v14_v0 = vlaneseq  ;;  %s152_s0 = inlined_call_operand.vmem [shape: f32[8,128], index: 0, kind: input, shape index: {}]   ;;  %s153_s1 = inlined_call_operand.vmem [shape: s32[8,1], index: 1, kind: input, shape index: {}]   ;;  %s154_s2 = inlined_call_operand.hbm [shape: f32[1,1], index: 2, kind: output, shape index: {}]  }
   0x1   :  { %7 = vsyncpa [#allocation3], 0  ;;  %v114_v1 = vmov 0   ;;  %v12_v2 = vld [vmem:[%s152_s0] sm:$0xff]  ;;  %vm55_vm2 = vcmask 0   ;;  %v115_v13 = vmov 0.0  }
   0x2   :  { %85 = vset.pattern.permute.xlu0 %v114_v1  ;;  %v15_v3 = vand.u32 127, %v14_v0  ;;  %v13_v5 = vld [vmem:[%s153_s1] sm:$0xff]  ;;  %56 = vst.msk [vmem:[#allocation2] sm:$0x1] %vm55_vm2, %v115_v13  ;;  %s116_s0 = smov [#allocation2]  }
   0x3   :  { %s74_s1 = sshll.u32 %s116_s0, 4  ;;  %s75_s1 = int_to_ptr.vmem [resolvable:$true] %s74_s1 }
   0x4   :  { %vm16_vm0 = vcmp.lt.s32.totalorder %v15_v3, 32  ;;  %s90_s13 = scalar_lea.vmem %s75_s1, 16  ;;  %s94_s14 = scalar_lea.vmem %s75_s1, 32 }
   0x5   :  { %v17_v4 = vsel %vm16_vm0, %v12_v2, -1e+30  ;;  %v36_v11 = vsel %vm16_vm0, %v12_v2, 0.0  ;;  %p91_p0 = scmp.ne.s32.totalorder %s75_s1, %s90_s13  ;;  %p95_p1 = scmp.lt.s32.totalorder %s75_s1, %s75_s1 }
   0x6   :  { %18 = vmax.xlane.f32.xlu0 %v17_v4  ;;  %p96_p2 = scmp.lt.s32.totalorder %s94_s14, %s90_s13 }
   0x8   :  { %p97_p3 = por %p96_p2, %p95_p1 }
   0x9   :  { %v57_v32 = vld [vmem:[#allocation2] sm:$0x1] }
   0xa   :  { %p98_p4 = pnand %p97_p3, %p91_p0 }
  0x1c   :  { %29 = vperm.xlu0 %85, %v13_v5  }
  0x93   :  { %v19_v6 = vpop.xlane.xlu0 %18 }
  0x94   :  { %v20_v7 = vsub.f32 %v17_v4, %v19_v6 }
  0x96   :  { %v21_v8 = vmul.f32 1.442695, %v20_v7 }
  0x98   :  { %86 = vpow2.f32 %v21_v8 }
  0x9b   :  { %v30_v10 = vpop.permute.xlu0 %29 }
  0x9c   :  { %vm31_vm1 = vcmp.eq.s32.totalorder %v15_v3, %v30_v10 }
  0x9d   :  { %v32_v12 = vsel %vm31_vm1, %v12_v2, 0.0 }
  0xa2   :  { %v87_v9 = vpop.eup %86 }
  0xa3   :  { %23 = vadd.xlane.f32.xlu1 %v87_v9 }
  0xa7   :  { %37 = vadd.xlane.f32.xlu1 %v36_v11 }
  0xab   :  { %33 = vadd.xlane.f32.xlu1 %v32_v12 }
 0x130   :  { %v24_v14 = vpop.xlane.xlu1 %23 }
 0x131   :  { %88 = vlog2.f32 %v24_v14 }
 0x134   :  { %v38_v15 = vpop.xlane.xlu1 %37 }
 0x135   :  { %v39_v20 = vmul.f32 0.03125, %v38_v15 }
 0x138   :  { %v34_v18 = vpop.xlane.xlu1 %33 }
 0x13b   :  { %v89_v16 = vpop.eup %88 }
 0x13c   :  { %v26_v17 = vmul.f32 0.6931472, %v89_v16 }
 0x13e   :  { %v27_v19 = vadd.f32 %v26_v17, %v19_v6 }
 0x140   :  { %v40_v21 = vsub.f32 %v27_v19, %v39_v20  ;;  %v35_v22 = vsub.f32 %v27_v19, %v34_v18 }
 0x142   :  { %v42_v23 = vmul.f32 0.1, %v40_v21  ;;  %v41_v24 = vmul.f32 0.9, %v35_v22 }
 0x144   :  { %v43_v25 = vadd.f32 %v42_v23, %v41_v24 }
 0x146   :  { %v58_v26 = vrot.slane %v43_v25, 4 }
 0x148   :  { %v59_v27 = vadd.f32 %v58_v26, %v43_v25 }
 0x14a   :  { %v60_v28 = vrot.slane %v59_v27, 2 }
 0x14c   :  { %v61_v29 = vadd.f32 %v60_v28, %v59_v27 }
 0x14e   :  { %v62_v30 = vrot.slane %v61_v29, 1 }
 0x150   :  { %v63_v31 = vadd.f32 %v62_v30, %v61_v29 }
 0x152   :  { %v64_v33 = vmul.f32 0.125, %v63_v31 }
 0x154   :  { %v65_v34 = vadd.f32 %v64_v33, %v57_v32 }
 0x156   :  { %67 = vst.msk [vmem:[#allocation2] sm:$0x1] %vm55_vm2, %v65_v34 }
 0x157   :  { %101 = shalt.err (!%p98_p4)
}
 0x158   :  { %s102_s17 = scalar_lea.hbm %s154_s2, 16 }
 0x159   :  { %p103_p5 = scmp.ne.s32.totalorder %s154_s2, %s102_s17  ;;  %p106_p6 = scmp.lt.u32.totalorder %s102_s17, %s154_s2 }
 0x15b   :  { %p108_p7 = pnand %p106_p6, %p103_p5 }
 0x15d   :  { %111 = shalt.err (!%p108_p7)
}
 0x15e   :  { %77 = dma.vmem_to_hbm [thread:$0]  %s75_s1, 16, %s154_s2, [#allocation3]  }
 0x15f   :  { %112 = dma.done.wait [#allocation3], 16  }
 0x160   :  { %113 = vsyncadd [#allocation3], 4294967280 }
 0x161   :  { %81 = vsyncpa [#allocation3], 1 }

</bundles_post_ra>
